<compile_context>
chip_gen: v7x
topology: tpu7x:2x2x1
jax: 0.10.0
libtpu: 0.0.40
codegen_flags: <defaults>
</compile_context>

<pallas_src>
import functools

import numpy as np

import jax
import jax.numpy as jnp
from jax import lax
from jax.experimental import pallas as pl
from jax.experimental.pallas import tpu as pltpu

EPS = 1e-5        # PyTorch BatchNorm2d default
LANE = 128
SUBLANE = 8


def _round_up(n, m):
    return ((n + m - 1) // m) * m


# ---------------------------------------------------------------------------
# Build-time helpers (run ONCE at init, never inside the jitted forward).
# ---------------------------------------------------------------------------
def _selection_matrix(batch, h, w, kh, kw, stride, pad, in_lanes=None):
    """Batched 0/1 gather matrix for channels-first (C, batch*positions) slabs.

    Row index:  b*h*w + r*w + c   (zero rows pad up to `in_lanes` if given).
    Col index:  t*npo + b*oh*ow + a*ow + bb, with npo = round_up(batch*oh*ow,
    128) so every tap's column block starts on a 128-lane boundary.  Each
    column has at most one nonzero, so `x @ G` is an exact gather that folds
    zero-padding, stride, batch and all taps into a single MXU matmul.
    """
    oh = (h + 2 * pad - kh) // stride + 1
    ow = (w + 2 * pad - kw) // stride + 1
    p_in, p_out = h * w, oh * ow
    rows = batch * p_in if in_lanes is None else in_lanes
    assert rows >= batch * p_in
    npo = _round_up(batch * p_out, LANE)
    g = np.zeros((rows, kh * kw * npo), np.float32)
    for b in range(batch):
        for a in range(oh):
            for bb in range(ow):
                for i in range(kh):
                    for j in range(kw):
                        r = a * stride + i - pad
                        c = bb * stride + j - pad
                        if 0 <= r < h and 0 <= c < w:
                            g[b * p_in + r * w + c,
                              (i * kw + j) * npo + b * p_out + a * ow + bb] = 1.0
    return g, oh, ow, npo


def _pack_conv_weight(w, cin_pad):
    """PyTorch conv weight (Cout, Cin, kh, kw) -> bf16 (Cout, taps*cin_pad),
    tap-major / channel-minor, with zero columns for padded input channels."""
    cout, cin, kh, kw = w.shape
    if cin_pad > cin:
        w = jnp.concatenate(
            [w, jnp.zeros((cout, cin_pad - cin, kh, kw), w.dtype)], axis=1)
    return (jnp.transpose(w, (0, 2, 3, 1))
            .reshape(cout, kh * kw * cin_pad).astype(jnp.bfloat16))


# ---------------------------------------------------------------------------
# In-kernel building blocks.
# ---------------------------------------------------------------------------
def _conv(x_bf16, g, w, taps):
    """One conv layer for the whole batch, channels-first.

    x_bf16 : (C, L_in)          bf16 activations (batch folded onto lanes)
    g      : (L_in, taps*npo)   bf16 0/1 selection matrix (pad+stride+taps)
    w      : (Cout, taps*C)     bf16 packed conv weight, tap-major
    returns (Cout, npo) f32
    """
    npo = g.shape[1] // taps
    # Spatial gather: exact (one nonzero per column), f32 accumulation.
    z = jnp.dot(x_bf16, g, preferred_element_type=jnp.float32)
    if taps > 1:
        # 128-aligned tap slices, stacked on sublanes -> (taps*C, npo).
        z = jnp.concatenate(
            [z[:, t * npo:(t + 1) * npo] for t in range(taps)], axis=0)
    # Channel/tap mix on the MXU, K = taps*C <= 24.  The cast back to bf16 is
    # exact (gathered values are bf16-representable).
    return jnp.dot(w, z.astype(jnp.bfloat16),
                   preferred_element_type=jnp.float32)


def _batchnorm(y, gamma, beta, count):
    """Training-mode BatchNorm on a (C, L) slab whose pad lanes are exact
    zeros; `count` is the number of real lanes.  Biased variance, eps=1e-5."""
    inv_n = 1.0 / float(count)
    mean = jnp.sum(y, axis=1, keepdims=True) * inv_n
    var = jnp.maximum(
        jnp.sum(y * y, axis=1, keepdims=True) * inv_n - mean * mean, 0.0)
    scale = gamma * lax.rsqrt(var + EPS)
    shift = beta - mean * scale
    return y * scale + shift


def _block_kernel(x_ref, g1_ref, g2_ref, g3_ref, g4_ref, gs_ref,
                  w1u_ref, w1v_ref, w2u_ref, w2v_ref, wsc_ref,
                  gamma1_ref, beta1_ref, gammat_ref, betat_ref,
                  o_ref, *, planes, count1, count2):
    x = x_ref[...]                                   # (cin_pad, N*H*W) bf16

    # ---- conv1_u -> conv1_v (one gather + one mix matmul each, whole batch)
    y = _conv(x, g1_ref[...], w1u_ref[...], 3)                       # (planes, 128)
    y = _conv(y.astype(jnp.bfloat16), g2_ref[...], w1v_ref[...], 3)  # (planes, 128)

    # ---- bn1 (per-batch statistics; pad lanes are exact zeros) + relu ----
    h = jnp.maximum(_batchnorm(y, gamma1_ref[...], beta1_ref[...], count1), 0.0)

    # ---- conv2_u -> conv2_v ----
    y = _conv(h.astype(jnp.bfloat16), g3_ref[...], w2u_ref[...], 3)
    y = _conv(y.astype(jnp.bfloat16), g4_ref[...], w2v_ref[...], 3)

    # ---- 1x1-conv shortcut (reuses the already-bf16 x slab) ----
    s = _conv(x, gs_ref[...], wsc_ref[...], 1)

    # ---- bn2 + shortcut-bn as ONE stats/normalize pass, residual, relu ----
    post = _batchnorm(jnp.concatenate([y, s], axis=0),
                      gammat_ref[...], betat_ref[...], count2)
    o_ref[...] = jnp.maximum(post[:planes, :] + post[planes:, :], 0.0)


# ---------------------------------------------------------------------------
# Module build + forward.
# ---------------------------------------------------------------------------
def init_basic_block_lr(key, batch, in_planes, planes, stride, height, width):
    """Precompute every kernel operand (batched selection matrices, bf16
    packed weights, shaped BN params).  The jitted forward is then
    reshape/cast -> one pallas_call -> slice/reshape."""
    if stride == 1 and in_planes == planes:
        raise NotImplementedError(
            "identity-shortcut configuration: the reference module's main path "
            "changes the spatial size (asymmetric kernels with padding=1), so "
            "its forward only type-checks for the conv-shortcut case.")

    # Spatial chain, matching PyTorch's floor((H + 2p - k)/s) + 1 per conv.
    g1, h1, w1, np1 = _selection_matrix(batch, height, width, 3, 1, stride, 1)
    g2, h2, w2, np2 = _selection_matrix(batch, h1, w1, 1, 3, stride, 1, in_lanes=np1)
    g3, h3, w3, np3 = _selection_matrix(batch, h2, w2, 3, 1, 1, 1, in_lanes=np2)
    g4, h4, w4, np4 = _selection_matrix(batch, h3, w3, 1, 3, 1, 1, in_lanes=np3)
    gs, hs, ws, nps = _selection_matrix(batch, height, width, 1, 1, stride, 0)
    if (h4, w4) != (hs, ws):
        raise ValueError(
            f"main path {(h4, w4)} and shortcut {(hs, ws)} spatial shapes "
            "differ for this input size -- the PyTorch module would fail too.")
    assert np4 == nps

    cin_pad = _round_up(in_planes, SUBLANE)
    ks = jax.random.split(key, 5)

    def conv_init(k, cout, cin, kh, kw):
        fan_in = cin * kh * kw
        w = jax.random.normal(k, (cout, cin, kh, kw), jnp.float32)
        return w / jnp.sqrt(float(fan_in))

    ones = jnp.ones((planes, 1), jnp.float32)
    zeros = jnp.zeros((planes, 1), jnp.float32)
    params = {
        # bf16 selection matrices: exact (0/1 entries), half the VMEM bytes.
        "g1": jnp.asarray(g1, jnp.bfloat16),
        "g2": jnp.asarray(g2, jnp.bfloat16),
        "g3": jnp.asarray(g3, jnp.bfloat16),
        "g4": jnp.asarray(g4, jnp.bfloat16),
        "gs": jnp.asarray(gs, jnp.bfloat16),
        "w1u": _pack_conv_weight(conv_init(ks[0], planes, in_planes, 3, 1), cin_pad),
        "w1v": _pack_conv_weight(conv_init(ks[1], planes, planes, 1, 3), planes),
        "w2u": _pack_conv_weight(conv_init(ks[2], planes, planes, 3, 1), planes),
        "w2v": _pack_conv_weight(conv_init(ks[3], planes, planes, 1, 3), planes),
        "wsc": _pack_conv_weight(conv_init(ks[4], planes, in_planes, 1, 1), cin_pad),
        # bn1 params and concatenated [bn2 ; shortcut-bn] params, shaped (C,1)
        # for channels-first (PyTorch init: weight=1, bias=0).
        "gamma1": ones, "beta1": zeros,
        "gamma_tail": jnp.concatenate([ones, ones], axis=0),
        "beta_tail": jnp.concatenate([zeros, zeros], axis=0),
    }
    meta = {"batch": batch, "in_planes": in_planes, "cin_pad": cin_pad,
            "planes": planes, "height": height, "width": width,
            "out_hw": (h4, w4), "np4": np4,
            "count1": batch * h2 * w2, "count2": batch * h4 * w4}
    return params, meta


def basic_block_lr_forward(x_nchw, params, meta):
    n, cin, hgt, wid = x_nchw.shape
    assert n == meta["batch"] and cin == meta["in_planes"]
    planes = meta["planes"]
    oh, ow = meta["out_hw"]
    hw = hgt * wid
    cin_pad = meta["cin_pad"]

    # NCHW -> channels-first slab with the batch folded onto the lane axis:
    # (cin_pad, N*H*W), cast to bf16 ONCE (shared by conv1_u and shortcut).
    x2 = jnp.transpose(x_nchw.reshape(n, cin, hw), (1, 0, 2)).reshape(cin, n * hw)
    x2 = jnp.pad(x2, ((0, cin_pad - cin), (0, 0))).astype(jnp.bfloat16)

    kernel = functools.partial(_block_kernel, planes=planes,
                               count1=meta["count1"], count2=meta["count2"])
    vmem = functools.partial(pl.BlockSpec, memory_space=pltpu.MemorySpace.VMEM)
    args = (x2,
            params["g1"], params["g2"], params["g3"], params["g4"], params["gs"],
            params["w1u"], params["w1v"], params["w2u"], params["w2v"],
            params["wsc"],
            params["gamma1"], params["beta1"],
            params["gamma_tail"], params["beta_tail"])

    out = pl.pallas_call(
        kernel,
        out_shape=jax.ShapeDtypeStruct((planes, meta["np4"]), jnp.float32),
        in_specs=[vmem() for _ in args],
        out_specs=vmem(),
    )(*args)

    # Lane-dense (planes, 128) kernel output -> drop pad lanes -> NCHW.
    out = out[:, :n * oh * ow].reshape(planes, n, oh * ow)
    return jnp.transpose(out, (1, 0, 2)).reshape(n, planes, oh, ow)


if __name__ == "__main__":
    in_planes, planes, stride = 4, 8, 2
    height = width = 12   # size for which main path and shortcut shapes agree
    batch = 2

    key = jax.random.PRNGKey(0)
    k_param, k_x = jax.random.split(key)

    params, meta = init_basic_block_lr(k_param, batch, in_planes, planes,
                                       stride, height, width)
    x = jax.random.normal(k_x, (batch, in_planes, height, width), jnp.float32)

    fwd = jax.jit(functools.partial(basic_block_lr_forward, meta=meta))
    out = jax.block_until_ready(fwd(x, params))

    oh, ow = meta["out_hw"]
    assert out.shape == (batch, planes, oh, ow), out.shape
    assert bool(jnp.all(jnp.isfinite(out)))
    assert bool(jnp.all(out >= 0.0))   # final ReLU
    print("KERNEL_OK")
</pallas_src>

<mosaic_0001>
module attributes {stable_mosaic.version = 11 : i64} {
  func.func @_block_kernel(%arg0: memref<8x288xbf16, #tpu.memory_space<vmem>>, %arg1: memref<288x384xbf16, #tpu.memory_space<vmem>>, %arg2: memref<128x384xbf16, #tpu.memory_space<vmem>>, %arg3: memref<128x384xbf16, #tpu.memory_space<vmem>>, %arg4: memref<128x384xbf16, #tpu.memory_space<vmem>>, %arg5: memref<288x128xbf16, #tpu.memory_space<vmem>>, %arg6: memref<8x24xbf16, #tpu.memory_space<vmem>>, %arg7: memref<8x24xbf16, #tpu.memory_space<vmem>>, %arg8: memref<8x24xbf16, #tpu.memory_space<vmem>>, %arg9: memref<8x24xbf16, #tpu.memory_space<vmem>>, %arg10: memref<8x8xbf16, #tpu.memory_space<vmem>>, %arg11: memref<8x1xf32, #tpu.memory_space<vmem>>, %arg12: memref<8x1xf32, #tpu.memory_space<vmem>>, %arg13: memref<16x1xf32, #tpu.memory_space<vmem>>, %arg14: memref<16x1xf32, #tpu.memory_space<vmem>>, %arg15: memref<8x128xf32, #tpu.memory_space<vmem>>) attributes {dimension_semantics = [], scalar_prefetch = 0 : i64, scratch_operands = 0 : i64, tpu.core_type = #tpu.core_type<tc>} {
    %c0 = arith.constant 0 : index
    %c0_0 = arith.constant 0 : index
    %0 = vector.load %arg0[%c0, %c0_0] : memref<8x288xbf16, #tpu.memory_space<vmem>>, vector<8x288xbf16>
    %c0_1 = arith.constant 0 : index
    %c0_2 = arith.constant 0 : index
    %1 = vector.load %arg1[%c0_1, %c0_2] : memref<288x384xbf16, #tpu.memory_space<vmem>>, vector<288x384xbf16>
    %c0_3 = arith.constant 0 : index
    %c0_4 = arith.constant 0 : index
    %2 = vector.load %arg6[%c0_3, %c0_4] : memref<8x24xbf16, #tpu.memory_space<vmem>>, vector<8x24xbf16>
    %cst = arith.constant dense<0.000000e+00> : vector<8x384xf32>
    %3 = tpu.matmul %0, %1, %cst {dimension_numbers = #tpu.dot_dimension_numbers<[1], [0], [0], [1], [0, 0, 1, 1], [], []>} : vector<8x288xbf16>, vector<288x384xbf16>, vector<8x384xf32> -> vector<8x384xf32>
    %4 = vector.extract_strided_slice %3 {offsets = [0, 0], sizes = [8, 128], strides = [1, 1]} : vector<8x384xf32> to vector<8x128xf32>
    %5 = vector.extract_strided_slice %3 {offsets = [0, 128], sizes = [8, 128], strides = [1, 1]} : vector<8x384xf32> to vector<8x128xf32>
    %6 = vector.extract_strided_slice %3 {offsets = [0, 256], sizes = [8, 128], strides = [1, 1]} : vector<8x384xf32> to vector<8x128xf32>
    %7 = tpu.concatenate %4, %5, %6 in 0 : vector<8x128xf32>, vector<8x128xf32>, vector<8x128xf32> -> vector<24x128xf32>
    %8 = arith.truncf %7 : vector<24x128xf32> to vector<24x128xbf16>
    %cst_5 = arith.constant dense<0.000000e+00> : vector<8x128xf32>
    %9 = tpu.matmul %2, %8, %cst_5 {dimension_numbers = #tpu.dot_dimension_numbers<[1], [0], [0], [1], [0, 0, 1, 1], [], []>} : vector<8x24xbf16>, vector<24x128xbf16>, vector<8x128xf32> -> vector<8x128xf32>
    %10 = arith.truncf %9 : vector<8x128xf32> to vector<8x128xbf16>
    %c0_6 = arith.constant 0 : index
    %c0_7 = arith.constant 0 : index
    %11 = vector.load %arg2[%c0_6, %c0_7] : memref<128x384xbf16, #tpu.memory_space<vmem>>, vector<128x384xbf16>
    %c0_8 = arith.constant 0 : index
    %c0_9 = arith.constant 0 : index
    %12 = vector.load %arg7[%c0_8, %c0_9] : memref<8x24xbf16, #tpu.memory_space<vmem>>, vector<8x24xbf16>
    %cst_10 = arith.constant dense<0.000000e+00> : vector<8x384xf32>
    %13 = tpu.matmul %10, %11, %cst_10 {dimension_numbers = #tpu.dot_dimension_numbers<[1], [0], [0], [1], [0, 0, 1, 1], [], []>} : vector<8x128xbf16>, vector<128x384xbf16>, vector<8x384xf32> -> vector<8x384xf32>
    %14 = vector.extract_strided_slice %13 {offsets = [0, 0], sizes = [8, 128], strides = [1, 1]} : vector<8x384xf32> to vector<8x128xf32>
    %15 = vector.extract_strided_slice %13 {offsets = [0, 128], sizes = [8, 128], strides = [1, 1]} : vector<8x384xf32> to vector<8x128xf32>
    %16 = vector.extract_strided_slice %13 {offsets = [0, 256], sizes = [8, 128], strides = [1, 1]} : vector<8x384xf32> to vector<8x128xf32>
    %17 = tpu.concatenate %14, %15, %16 in 0 : vector<8x128xf32>, vector<8x128xf32>, vector<8x128xf32> -> vector<24x128xf32>
    %18 = arith.truncf %17 : vector<24x128xf32> to vector<24x128xbf16>
    %cst_11 = arith.constant dense<0.000000e+00> : vector<8x128xf32>
    %19 = tpu.matmul %12, %18, %cst_11 {dimension_numbers = #tpu.dot_dimension_numbers<[1], [0], [0], [1], [0, 0, 1, 1], [], []>} : vector<8x24xbf16>, vector<24x128xbf16>, vector<8x128xf32> -> vector<8x128xf32>
    %c0_12 = arith.constant 0 : index
    %c0_13 = arith.constant 0 : index
    %20 = vector.load %arg11[%c0_12, %c0_13] : memref<8x1xf32, #tpu.memory_space<vmem>>, vector<8x1xf32>
    %c0_14 = arith.constant 0 : index
    %c0_15 = arith.constant 0 : index
    %21 = vector.load %arg12[%c0_14, %c0_15] : memref<8x1xf32, #tpu.memory_space<vmem>>, vector<8x1xf32>
    %cst_16 = arith.constant dense<0.000000e+00> : vector<8xf32>
    %22 = vector.multi_reduction <add>, %19, %cst_16 [1] : vector<8x128xf32> to vector<8xf32>
    %23 = vector.shape_cast %22 : vector<8xf32> to vector<8x1xf32>
    %cst_17 = arith.constant 3.125000e-02 : f32
    %24 = vector.broadcast %cst_17 : f32 to vector<8x1xf32>
    %25 = arith.mulf %23, %24 : vector<8x1xf32>
    %26 = arith.mulf %19, %19 : vector<8x128xf32>
    %cst_18 = arith.constant dense<0.000000e+00> : vector<8xf32>
    %27 = vector.multi_reduction <add>, %26, %cst_18 [1] : vector<8x128xf32> to vector<8xf32>
    %28 = vector.shape_cast %27 : vector<8xf32> to vector<8x1xf32>
    %cst_19 = arith.constant 3.125000e-02 : f32
    %29 = vector.broadcast %cst_19 : f32 to vector<8x1xf32>
    %30 = arith.mulf %28, %29 : vector<8x1xf32>
    %31 = arith.mulf %25, %25 : vector<8x1xf32>
    %32 = arith.subf %30, %31 : vector<8x1xf32>
    %cst_20 = arith.constant 0.000000e+00 : f32
    %33 = vector.broadcast %cst_20 : f32 to vector<8x1xf32>
    %34 = arith.maximumf %32, %33 : vector<8x1xf32>
    %cst_21 = arith.constant 9.99999974E-6 : f32
    %35 = vector.broadcast %cst_21 : f32 to vector<8x1xf32>
    %36 = arith.addf %34, %35 : vector<8x1xf32>
    %37 = math.rsqrt %36 : vector<8x1xf32>
    %38 = arith.mulf %20, %37 : vector<8x1xf32>
    %39 = arith.mulf %25, %38 : vector<8x1xf32>
    %40 = arith.subf %21, %39 : vector<8x1xf32>
    %41 = vector.broadcast %38 : vector<8x1xf32> to vector<8x128xf32>
    %42 = arith.mulf %19, %41 : vector<8x128xf32>
    %43 = vector.broadcast %40 : vector<8x1xf32> to vector<8x128xf32>
    %44 = arith.addf %42, %43 : vector<8x128xf32>
    %cst_22 = arith.constant 0.000000e+00 : f32
    %45 = vector.broadcast %cst_22 : f32 to vector<8x128xf32>
    %46 = arith.maximumf %44, %45 : vector<8x128xf32>
    %47 = arith.truncf %46 : vector<8x128xf32> to vector<8x128xbf16>
    %c0_23 = arith.constant 0 : index
    %c0_24 = arith.constant 0 : index
    %48 = vector.load %arg3[%c0_23, %c0_24] : memref<128x384xbf16, #tpu.memory_space<vmem>>, vector<128x384xbf16>
    %c0_25 = arith.constant 0 : index
    %c0_26 = arith.constant 0 : index
    %49 = vector.load %arg8[%c0_25, %c0_26] : memref<8x24xbf16, #tpu.memory_space<vmem>>, vector<8x24xbf16>
    %cst_27 = arith.constant dense<0.000000e+00> : vector<8x384xf32>
    %50 = tpu.matmul %47, %48, %cst_27 {dimension_numbers = #tpu.dot_dimension_numbers<[1], [0], [0], [1], [0, 0, 1, 1], [], []>} : vector<8x128xbf16>, vector<128x384xbf16>, vector<8x384xf32> -> vector<8x384xf32>
    %51 = vector.extract_strided_slice %50 {offsets = [0, 0], sizes = [8, 128], strides = [1, 1]} : vector<8x384xf32> to vector<8x128xf32>
    %52 = vector.extract_strided_slice %50 {offsets = [0, 128], sizes = [8, 128], strides = [1, 1]} : vector<8x384xf32> to vector<8x128xf32>
    %53 = vector.extract_strided_slice %50 {offsets = [0, 256], sizes = [8, 128], strides = [1, 1]} : vector<8x384xf32> to vector<8x128xf32>
    %54 = tpu.concatenate %51, %52, %53 in 0 : vector<8x128xf32>, vector<8x128xf32>, vector<8x128xf32> -> vector<24x128xf32>
    %55 = arith.truncf %54 : vector<24x128xf32> to vector<24x128xbf16>
    %cst_28 = arith.constant dense<0.000000e+00> : vector<8x128xf32>
    %56 = tpu.matmul %49, %55, %cst_28 {dimension_numbers = #tpu.dot_dimension_numbers<[1], [0], [0], [1], [0, 0, 1, 1], [], []>} : vector<8x24xbf16>, vector<24x128xbf16>, vector<8x128xf32> -> vector<8x128xf32>
    %57 = arith.truncf %56 : vector<8x128xf32> to vector<8x128xbf16>
    %c0_29 = arith.constant 0 : index
    %c0_30 = arith.constant 0 : index
    %58 = vector.load %arg4[%c0_29, %c0_30] : memref<128x384xbf16, #tpu.memory_space<vmem>>, vector<128x384xbf16>
    %c0_31 = arith.constant 0 : index
    %c0_32 = arith.constant 0 : index
    %59 = vector.load %arg9[%c0_31, %c0_32] : memref<8x24xbf16, #tpu.memory_space<vmem>>, vector<8x24xbf16>
    %cst_33 = arith.constant dense<0.000000e+00> : vector<8x384xf32>
    %60 = tpu.matmul %57, %58, %cst_33 {dimension_numbers = #tpu.dot_dimension_numbers<[1], [0], [0], [1], [0, 0, 1, 1], [], []>} : vector<8x128xbf16>, vector<128x384xbf16>, vector<8x384xf32> -> vector<8x384xf32>
    %61 = vector.extract_strided_slice %60 {offsets = [0, 0], sizes = [8, 128], strides = [1, 1]} : vector<8x384xf32> to vector<8x128xf32>
    %62 = vector.extract_strided_slice %60 {offsets = [0, 128], sizes = [8, 128], strides = [1, 1]} : vector<8x384xf32> to vector<8x128xf32>
    %63 = vector.extract_strided_slice %60 {offsets = [0, 256], sizes = [8, 128], strides = [1, 1]} : vector<8x384xf32> to vector<8x128xf32>
    %64 = tpu.concatenate %61, %62, %63 in 0 : vector<8x128xf32>, vector<8x128xf32>, vector<8x128xf32> -> vector<24x128xf32>
    %65 = arith.truncf %64 : vector<24x128xf32> to vector<24x128xbf16>
    %cst_34 = arith.constant dense<0.000000e+00> : vector<8x128xf32>
    %66 = tpu.matmul %59, %65, %cst_34 {dimension_numbers = #tpu.dot_dimension_numbers<[1], [0], [0], [1], [0, 0, 1, 1], [], []>} : vector<8x24xbf16>, vector<24x128xbf16>, vector<8x128xf32> -> vector<8x128xf32>
    %c0_35 = arith.constant 0 : index
    %c0_36 = arith.constant 0 : index
    %67 = vector.load %arg5[%c0_35, %c0_36] : memref<288x128xbf16, #tpu.memory_space<vmem>>, vector<288x128xbf16>
    %c0_37 = arith.constant 0 : index
    %c0_38 = arith.constant 0 : index
    %68 = vector.load %arg10[%c0_37, %c0_38] : memref<8x8xbf16, #tpu.memory_space<vmem>>, vector<8x8xbf16>
    %cst_39 = arith.constant dense<0.000000e+00> : vector<8x128xf32>
    %69 = tpu.matmul %0, %67, %cst_39 {dimension_numbers = #tpu.dot_dimension_numbers<[1], [0], [0], [1], [0, 0, 1, 1], [], []>} : vector<8x288xbf16>, vector<288x128xbf16>, vector<8x128xf32> -> vector<8x128xf32>
    %70 = arith.truncf %69 : vector<8x128xf32> to vector<8x128xbf16>
    %cst_40 = arith.constant dense<0.000000e+00> : vector<8x128xf32>
    %71 = tpu.matmul %68, %70, %cst_40 {dimension_numbers = #tpu.dot_dimension_numbers<[1], [0], [0], [1], [0, 0, 1, 1], [], []>} : vector<8x8xbf16>, vector<8x128xbf16>, vector<8x128xf32> -> vector<8x128xf32>
    %72 = tpu.concatenate %66, %71 in 0 : vector<8x128xf32>, vector<8x128xf32> -> vector<16x128xf32>
    %c0_41 = arith.constant 0 : index
    %c0_42 = arith.constant 0 : index
    %73 = vector.load %arg13[%c0_41, %c0_42] : memref<16x1xf32, #tpu.memory_space<vmem>>, vector<16x1xf32>
    %c0_43 = arith.constant 0 : index
    %c0_44 = arith.constant 0 : index
    %74 = vector.load %arg14[%c0_43, %c0_44] : memref<16x1xf32, #tpu.memory_space<vmem>>, vector<16x1xf32>
    %cst_45 = arith.constant dense<0.000000e+00> : vector<16xf32>
    %75 = vector.multi_reduction <add>, %72, %cst_45 [1] : vector<16x128xf32> to vector<16xf32>
    %76 = vector.shape_cast %75 : vector<16xf32> to vector<16x1xf32>
    %cst_46 = arith.constant 0.013888889 : f32
    %77 = vector.broadcast %cst_46 : f32 to vector<16x1xf32>
    %78 = arith.mulf %76, %77 : vector<16x1xf32>
    %79 = arith.mulf %72, %72 : vector<16x128xf32>
    %cst_47 = arith.constant dense<0.000000e+00> : vector<16xf32>
    %80 = vector.multi_reduction <add>, %79, %cst_47 [1] : vector<16x128xf32> to vector<16xf32>
    %81 = vector.shape_cast %80 : vector<16xf32> to vector<16x1xf32>
    %cst_48 = arith.constant 0.013888889 : f32
    %82 = vector.broadcast %cst_48 : f32 to vector<16x1xf32>
    %83 = arith.mulf %81, %82 : vector<16x1xf32>
    %84 = arith.mulf %78, %78 : vector<16x1xf32>
    %85 = arith.subf %83, %84 : vector<16x1xf32>
    %cst_49 = arith.constant 0.000000e+00 : f32
    %86 = vector.broadcast %cst_49 : f32 to vector<16x1xf32>
    %87 = arith.maximumf %85, %86 : vector<16x1xf32>
    %cst_50 = arith.constant 9.99999974E-6 : f32
    %88 = vector.broadcast %cst_50 : f32 to vector<16x1xf32>
    %89 = arith.addf %87, %88 : vector<16x1xf32>
    %90 = math.rsqrt %89 : vector<16x1xf32>
    %91 = arith.mulf %73, %90 : vector<16x1xf32>
    %92 = arith.mulf %78, %91 : vector<16x1xf32>
    %93 = arith.subf %74, %92 : vector<16x1xf32>
    %94 = vector.broadcast %91 : vector<16x1xf32> to vector<16x128xf32>
    %95 = arith.mulf %72, %94 : vector<16x128xf32>
    %96 = vector.broadcast %93 : vector<16x1xf32> to vector<16x128xf32>
    %97 = arith.addf %95, %96 : vector<16x128xf32>
    %98 = vector.extract_strided_slice %97 {offsets = [0, 0], sizes = [8, 128], strides = [1, 1]} : vector<16x128xf32> to vector<8x128xf32>
    %99 = vector.extract_strided_slice %97 {offsets = [8, 0], sizes = [8, 128], strides = [1, 1]} : vector<16x128xf32> to vector<8x128xf32>
    %100 = arith.addf %98, %99 : vector<8x128xf32>
    %cst_51 = arith.constant 0.000000e+00 : f32
    %101 = vector.broadcast %cst_51 : f32 to vector<8x128xf32>
    %102 = arith.maximumf %100, %101 : vector<8x128xf32>
    %c0_52 = arith.constant 0 : index
    %c0_53 = arith.constant 0 : index
    %103 = vector.load %arg15[%c0_52, %c0_53] : memref<8x128xf32, #tpu.memory_space<vmem>>, vector<8x128xf32>
    tpu.vector_store %arg15[%c0_52, %c0_53], %102 {strides = array<i32>} : memref<8x128xf32, #tpu.memory_space<vmem>>, vector<8x128xf32>,
    return
  }
}

</mosaic_0001>

<bundles_post_ra>
// kernel: basic_block_lr_forward.1
= control target key start
LH: loop header
LB: loop body
LE: loop exit
PB: predicated region body
PF: predicated region fallthrough
CT: control target
= control target key end

     0   :  { %20 = vsyncpa [#allocation3], 0  ;;  %s3068_s0 = inlined_call_operand.vmem [shape: bf16[8,288], index: 0, kind: input, shape index: {}]   ;;  %s3069_s1 = inlined_call_operand.vmem [shape: bf16[288,384], index: 1, kind: input, shape index: {}]   ;;  %s3070_s2 = inlined_call_operand.hbm [shape: bf16[128,384], index: 2, kind: input, shape index: {}]   ;;  %s3071_s3 = inlined_call_operand.hbm [shape: bf16[128,384], index: 3, kind: input, shape index: {}]   ;;  %s3072_s4 = inlined_call_operand.hbm [shape: bf16[128,384], index: 4, kind: input, shape index: {}]   ;;  %s3073_s5 = inlined_call_operand.hbm [shape: bf16[288,128], index: 5, kind: input, shape index: {}]   ;;  %s3074_s6 = inlined_call_operand.vmem [shape: bf16[8,24], index: 6, kind: input, shape index: {}]   ;;  %s3075_s7 = inlined_call_operand.vmem [shape: bf16[8,24], index: 7, kind: input, shape index: {}]   ;;  %s3076_s8 = inlined_call_operand.vmem [shape: bf16[8,24], index: 8, kind: input, shape index: {}]   ;;  %s3077_s9 = inlined_call_operand.vmem [shape: bf16[8,24], index: 9, kind: input, shape index: {}]   ;;  %s3078_s10 = inlined_call_operand.vmem [shape: bf16[8,8], index: 10, kind: input, shape index: {}]   ;;  %s3079_s11 = inlined_call_operand.vmem [shape: f32[8,1], index: 11, kind: input, shape index: {}]   ;;  %s3080_s12 = inlined_call_operand.vmem [shape: f32[8,1], index: 12, kind: input, shape index: {}]   ;;  %s3081_s13 = inlined_call_operand.vmem [shape: f32[16,1], index: 13, kind: input, shape index: {}]   ;;  %s3082_s14 = inlined_call_operand.vmem [shape: f32[16,1], index: 14, kind: input, shape index: {}]   ;;  %s3083_s15 = inlined_call_operand.vmem [shape: f32[8,128], index: 15, kind: output, shape index: {}]  }
   0x1   :  { %21 = vsyncpa [#allocation5], 0 }
   0x2   :  { %22 = vsyncpa [#allocation8], 0  ;;  %s2604_s18 = smov [#allocation4]   ;;  %s2605_s20 = smov [#allocation2]  }
   0x3   :  { %s44_s19 = sshll.u32 %s2604_s18, 4  ;;  %s32_s21 = sshll.u32 %s2605_s20, 4  ;;  %s45_s19 = int_to_ptr.vmem [resolvable:$true] %s44_s19  ;;  %s2695_s21 = int_to_ptr.vmem [resolvable:$true] %s32_s21 }
   0x4   :  { %s2510_s24 = scalar_lea.hbm %s3071_s3, 3072 }
   0x5   :  { %p2511_p0 = scmp.ne.s32.totalorder %s3071_s3, %s2510_s24  ;;  %p2514_p1 = scmp.lt.u32.totalorder %s2510_s24, %s3071_s3 }
   0x7   :  { %p2516_p2 = pnand %p2514_p1, %p2511_p0 }
   0x9   :  { %2519 = shalt.err (!%p2516_p2)
}
   0xa   :  { %s2520_s29 = scalar_lea.vmem %s45_s19, 3072  ;;  %p2525_p4 = scmp.lt.s32.totalorder %s45_s19, %s45_s19 }
   0xb   :  { %p2521_p3 = scmp.ne.s32.totalorder %s45_s19, %s2520_s29  ;;  %p2526_p5 = scmp.lt.s32.totalorder %s2520_s29, %s2520_s29 }
   0xd   :  { %p2527_p6 = por %p2526_p5, %p2525_p4 }
   0xf   :  { %p2528_p7 = pnand %p2527_p6, %p2521_p3 }
  0x11   :  { %2531 = shalt.err (!%p2528_p7)
}
  0x12   :  { %s2606_s30 = smov 192   ;;  %s2607_s16 = smov 12  }
  0x13   :  { %50 = dma.hbm_to_vmem [thread:$0]  %s3071_s3, 3072, %s45_s19, [#allocation5], %s2606_s30, %s2606_s30, %s2607_s16  }
  0x14   :  { %s2532_s23 = scalar_lea.hbm %s3070_s2, 3072 }
  0x15   :  { %p2533_p8 = scmp.ne.s32.totalorder %s3070_s2, %s2532_s23  ;;  %p2536_p9 = scmp.lt.u32.totalorder %s2532_s23, %s3070_s2 }
  0x17   :  { %p2538_p10 = pnand %p2536_p9, %p2533_p8 }
  0x19   :  { %2541 = shalt.err (!%p2538_p10)
}
  0x1a   :  { %s2542_s28 = scalar_lea.vmem %s2695_s21, 3072  ;;  %p2547_p12 = scmp.lt.s32.totalorder %s2695_s21, %s2695_s21 }
  0x1b   :  { %p2543_p11 = scmp.ne.s32.totalorder %s2695_s21, %s2542_s28  ;;  %p2548_p13 = scmp.lt.s32.totalorder %s2542_s28, %s2542_s28 }
  0x1d   :  { %p2549_p0 = por %p2548_p13, %p2547_p12 }
  0x1f   :  { %p2550_p1 = pnand %p2549_p0, %p2543_p11 }
  0x21   :  { %2553 = shalt.err (!%p2550_p1)
}
  0x22   :  { %38 = dma.hbm_to_vmem [thread:$0]  %s3070_s2, 3072, %s2695_s21, [#allocation3], %s2606_s30, %s2606_s30, %s2607_s16  }
  0x23   :  { %s2608_s29 = smov [#allocation6]   ;;  %s2609_s18 = smov [#allocation7]  }
  0x24   :  { %s56_s17 = sshll.u32 %s2608_s29, 4  ;;  %s68_s20 = sshll.u32 %s2609_s18, 4  ;;  %s57_s17 = int_to_ptr.vmem [resolvable:$true] %s56_s17  ;;  %s2732_s20 = int_to_ptr.vmem [resolvable:$true] %s68_s20 }
  0x25   :  { %s2554_s24 = scalar_lea.hbm %s3072_s4, 3072 }
  0x26   :  { %p2555_p2 = scmp.ne.s32.totalorder %s3072_s4, %s2554_s24  ;;  %p2558_p3 = scmp.lt.u32.totalorder %s2554_s24, %s3072_s4 }
  0x28   :  { %p2560_p4 = pnand %p2558_p3, %p2555_p2 }
  0x2a   :  { %2563 = shalt.err (!%p2560_p4)
}
  0x2b   :  { %s2564_s2 = scalar_lea.vmem %s57_s17, 3072  ;;  %p2569_p6 = scmp.lt.s32.totalorder %s57_s17, %s57_s17 }
  0x2c   :  { %p2565_p5 = scmp.ne.s32.totalorder %s57_s17, %s2564_s2  ;;  %p2570_p7 = scmp.lt.s32.totalorder %s2564_s2, %s2564_s2 }
  0x2e   :  { %p2571_p8 = por %p2570_p7, %p2569_p6 }
  0x30   :  { %p2572_p9 = pnand %p2571_p8, %p2565_p5 }
  0x32   :  { %2575 = shalt.err (!%p2572_p9)
}
  0x33   :  { %62 = dma.hbm_to_vmem [thread:$0]  %s3072_s4, 3072, %s57_s17, [#allocation5], %s2606_s30, %s2606_s30, %s2607_s16  }
  0x34   :  { %s2576_s18 = scalar_lea.hbm %s3073_s5, 2304 }
  0x35   :  { %p2577_p10 = scmp.ne.s32.totalorder %s3073_s5, %s2576_s18  ;;  %p2580_p11 = scmp.lt.u32.totalorder %s2576_s18, %s3073_s5 }
  0x37   :  { %p2582_p12 = pnand %p2580_p11, %p2577_p10 }
  0x39   :  { %2585 = shalt.err (!%p2582_p12)
}
  0x3a   :  { %s2586_s26 = scalar_lea.vmem %s2732_s20, 2304  ;;  %p2591_p0 = scmp.lt.s32.totalorder %s2732_s20, %s2732_s20 }
  0x3b   :  { %p2587_p13 = scmp.ne.s32.totalorder %s2732_s20, %s2586_s26  ;;  %p2592_p1 = scmp.lt.s32.totalorder %s2586_s26, %s2586_s26 }
  0x3d   :  { %p2593_p2 = por %p2592_p1, %p2591_p0 }
  0x3f   :  { %p2594_p3 = pnand %p2593_p2, %p2587_p13 }
  0x41   :  { %2597 = shalt.err (!%p2594_p3)
}
  0x42   :  { %s2610_s4 = smov 64   ;;  %s2611_s30 = smov 4  }
  0x43   :  { %74 = dma.hbm_to_vmem [thread:$0]  %s3073_s5, 2304, %s2732_s20, [#allocation8], %s2610_s4, %s2610_s4, %s2611_s30  }
  0x44   :  { %2598 = dma.done.wait [#allocation3], 3072  }
  0x45   :  { %2599 = vsyncadd [#allocation3], 4294964224 }
  0x46   :  { %2600 = dma.done.wait [#allocation5], 6144  }
  0x47   :  { %2601 = vsyncadd [#allocation5], 4294961152 }
  0x48   :  { %2602 = dma.done.wait [#allocation8], 2304  }
  0x49   :  { %2603 = vsyncadd [#allocation8], 4294964992  ;;  %v2612_v0 = vmov 0   ;;  %v2314_v1 = vld [vmem:[%s3069_s1 + $0x4] ss:$12 sps:$4 sm:$0xff]   ;;  %vm479_vm0 = vcmask 261120  }
  0x4a   :  { %556 = vmatprep.mubr.bf16.mxu1 %v2612_v0  ;;  %2312 = vset.pattern.permute.xlu1 %v2612_v0  ;;  %v2316_v2 = vld [vmem:[%s3069_s1] ss:$12 sps:$4 sm:$0xff]   ;;  %v2317_v3 = vld [vmem:[%s3069_s1 + $0x1c] ss:$12 sps:$4 sm:$0xff]   ;;  %v2319_v4 = vld [vmem:[%s3069_s1 + $0x18] ss:$12 sps:$4 sm:$0xff]  }
  0x4b   :  { %2313 = vset.pattern.permute.xlu0 %v2612_v0  ;;  %483 = vmatprep.subr.bf16.mxu0 %v2314_v1  ;;  %v2320_v5 = vld [vmem:[%s3069_s1 + $0x34] ss:$12 sps:$4 sm:$0xff]   ;;  %v2326_v6 = vld [vmem:[%s3069_s1 + $0x184] ss:$12 sps:$4 sm:$0xff]   ;;  %v2323_v9 = vld [vmem:[%s3069_s1 + $0x4c] ss:$12 sps:$4 sm:$0xff]  }
  0x4c   :  { %484 = vmatpush1.bf16.msra.mxu0 %v2316_v2  ;;  %v2328_v7 = vld [vmem:[%s3069_s1 + $0x180] ss:$12 sps:$4 sm:$0xff]   ;;  %v2322_v8 = vld [vmem:[%s3069_s1 + $0x30] ss:$12 sps:$4 sm:$0xff]   ;;  %524 = vmatprep.subr.bf16.mxu1 %v2326_v6  ;;  %v2334_v11 = vld [vmem:[%s3069_s1 + $0x198] ss:$12 sps:$4 sm:$0xff]  }
  0x4d   :  { %485 = vmatprep.subr.bf16.mxu0 %v2317_v3  ;;  %v2332_v10 = vld [vmem:[%s3069_s1 + $0x19c] ss:$12 sps:$4 sm:$0xff]   ;;  %525 = vmatpush1.bf16.msra.mxu1 %v2328_v7  ;;  %v2329_v13 = vld [vmem:[%s3069_s1 + $0x64] ss:$12 sps:$4 sm:$0xff]   ;;  %v2331_v17 = vld [vmem:[%s3069_s1 + $0x60] ss:$12 sps:$4 sm:$0xff]  }
  0x4e   :  { %v2325_v12 = vld [vmem:[%s3069_s1 + $0x48] ss:$12 sps:$4 sm:$0xff]   ;;  %526 = vmatprep.subr.bf16.mxu1 %v2332_v10  ;;  %v2344_v18 = vld [vmem:[%s3069_s1 + $0xe0] ss:$12 sps:$4 sm:$0xff]   ;;  %v2349_v21 = vld [vmem:[%s3069_s1 + $0xf8] ss:$12 sps:$4 sm:$0xff]  }
  0x4f   :  { %v2338_v14 = vld [vmem:[%s3069_s1 + $0xc8] ss:$12 sps:$4 sm:$0xff]   ;;  %v2345_v20 = vld [vmem:[%s3069_s1 + $0x20] ss:$12 sps:$4 sm:$0xff]   ;;  %v2337_v22 = vld [vmem:[%s3069_s1 + $0x78] ss:$12 sps:$4 sm:$0xff]  }
  0x50   :  { %486 = vmatpush1.bf16.msra.mxu0 %v2319_v4  ;;  %v2814_v15 = vld [vmem:[%s3068_s0 + $0x8] ss:$0 sps:$4 sm:$0xff]   ;;  %v2341_v23 = vld [vmem:[%s3069_s1 + $0x94] ss:$12 sps:$4 sm:$0xff]   ;;  %v2350_v24 = vld [vmem:[%s3069_s1 + $0x38] ss:$12 sps:$4 sm:$0xff]  }
  0x51   :  { %487 = vmatprep.subr.bf16.mxu0 %v2320_v5  ;;  %527 = vmatpush1.bf16.msra.mxu1 %v2334_v11  ;;  %v2340_v16 = vld [vmem:[%s3069_s1 + $0x8] ss:$12 sps:$4 sm:$0xff]   ;;  %v2354_v25 = vld [vmem:[%s3069_s1 + $0x110] ss:$12 sps:$4 sm:$0xff]   ;;  %v2346_v27 = vld [vmem:[%s3069_s1 + $0xac] ss:$12 sps:$4 sm:$0xff]  }
  0x52   :  { %2094 = vmatprep.subr.bf16.mxu1 %v2338_v14  ;;  %v2335_v19 = vld [vmem:[%s3069_s1 + $0x7c] ss:$12 sps:$4 sm:$0xff]   ;;  %v2351_v31 = vld [vmem:[%s3069_s1 + $0xc4] ss:$12 sps:$4 sm:$0xff]   ;;  %v2364_v33 = vld [vmem:[%s3069_s1 + $0x140] ss:$12 sps:$4 sm:$0xff]  }
  0x53   :  { %v2343_v26 = vld [vmem:[%s3069_s1 + $0x90] ss:$12 sps:$4 sm:$0xff]   ;;  %v2359_v29 = vld [vmem:[%s3069_s1 + $0x128] ss:$12 sps:$4 sm:$0xff]   ;;  %v2353_v34 = vld [vmem:[%s3069_s1 + $0xc0] ss:$12 sps:$4 sm:$0xff]  }
  0x54   :  { %488 = vmatpush1.bf16.msra.mxu0 %v2322_v8  ;;  %1996 = vmatmul.mubr.msk.bf16.vlgmr.msra.gmra.mrb[0].mxu1 %vm479_vm0, %v2814_v15  ;;  %v2355_v28 = vld [vmem:[%s3069_s1 + $0x50] ss:$12 sps:$4 sm:$0xff]   ;;  %v2348_v30 = vld [vmem:[%s3069_s1 + $0xa8] ss:$12 sps:$4 sm:$0xff]   ;;  %v2365_v36 = vld [vmem:[%s3069_s1 + $0x80] ss:$12 sps:$4 sm:$0xff]  }
  0x55   :  { %489 = vmatprep.subr.bf16.mxu0 %v2323_v9  ;;  %2095 = vmatpush3.bf16.msra.mxu1 %v2340_v16  ;;  %v2360_v32 = vld [vmem:[%s3069_s1 + $0x68] ss:$12 sps:$4 sm:$0xff]   ;;  %v2369_v37 = vld [vmem:[%s3069_s1 + $0x158] ss:$12 sps:$4 sm:$0xff]   ;;  %v2374_v41 = vld [vmem:[%s3069_s1 + $0x170] ss:$12 sps:$4 sm:$0xff]  }
  0x56   :  { %2096 = vmatprep.subr.bf16.mxu1 %v2344_v18  ;;  %v2356_v35 = vld [vmem:[%s3069_s1 + $0xdc] ss:$12 sps:$4 sm:$0xff]   ;;  %v2358_v38 = vld [vmem:[%s3069_s1 + $0xd8] ss:$12 sps:$4 sm:$0xff]   ;;  %v2361_v39 = vld [vmem:[%s3069_s1 + $0xf4] ss:$12 sps:$4 sm:$0xff]  }
  0x57   :  { %v2370_v40 = vld [vmem:[%s3069_s1 + $0x98] ss:$12 sps:$4 sm:$0xff]   ;;  %v2363_v43 = vld [vmem:[%s3069_s1 + $0xf0] ss:$12 sps:$4 sm:$0xff]   ;;  %v2368_v47 = vld [vmem:[%s3069_s1 + $0x108] ss:$12 sps:$4 sm:$0xff]  }
  0x58   :  { %490 = vmatpush1.bf16.msra.mxu0 %v2325_v12  ;;  %v106_v42 = vld [vmem:[%s3068_s0] sm:$0xff]  ;;  %v2366_v45 = vld [vmem:[%s3069_s1 + $0x10c] ss:$12 sps:$4 sm:$0xff]   ;;  %v2375_v46 = vld [vmem:[%s3069_s1 + $0xb0] ss:$12 sps:$4 sm:$0xff]   ;;  %v2613_v53 = vmov 0.0  }
  0x59   :  { %491 = vmatprep.subr.bf16.mxu0 %v2329_v13  ;;  %2097 = vmatpush3.bf16.msra.mxu1 %v2345_v20  ;;  %v2902_v44 = vcombine.high %v106_v42, %v106_v42  ;;  %v2371_v48 = vld [vmem:[%s3069_s1 + $0x124] ss:$12 sps:$4 sm:$0xff]   ;;  %v2381_v49 = vld [vmem:[%s3069_s1 + $0x188] ss:$12 sps:$4 sm:$0xff]   ;;  %v2921_v50 = vcombine.low %v106_v42, %v106_v42  ;;  %v2373_v51 = vld [vmem:[%s3069_s1 + $0x120] ss:$12 sps:$4 sm:$0xff]  }
  0x5a   :  { %2098 = vmatprep.subr.bf16.mxu1 %v2349_v21  ;;  %v2376_v52 = vld [vmem:[%s3069_s1 + $0x13c] ss:$12 sps:$4 sm:$0xff]   ;;  %v2385_v54 = vld [vmem:[%s3069_s1 + $0x1a0] ss:$12 sps:$4 sm:$0xff]   ;;  %v2378_v55 = vld [vmem:[%s3069_s1 + $0x138] ss:$12 sps:$4 sm:$0xff]  }
  0x5b   :  { %597 = vmatprep.mubr.bf16.mxu1 %v2902_v44  ;;  %515 = vmatprep.mubr.bf16.mxu0 %v2902_v44  ;;  %vm2614_vm1 = vmmov 0   ;;  %v2382_v56 = vld [vmem:[%s3069_s1 + $0x154] ss:$12 sps:$4 sm:$0xff]   ;;  %v2384_v57 = vld [vmem:[%s3069_s1 + $0x150] ss:$12 sps:$4 sm:$0xff]   ;;  %vm651_vm2 = vcmask 1043456  }
  0x5c   :  { %492 = vmatpush1.bf16.msra.mxu0 %v2331_v17  ;;  %v2386_v58 = vld [vmem:[%s3069_s1 + $0x16c] ss:$12 sps:$4 sm:$0xff]   ;;  %v2388_v59 = vld [vmem:[%s3069_s1 + $0x168] ss:$12 sps:$4 sm:$0xff]   ;;  %v2404_v63 = vld [vmem:[#allocation2 + $0x50] ss:$12 sps:$4 sm:$0xff]  }
  0x5d   :  { %493 = vmatprep.subr.bf16.mxu0 %v2335_v19  ;;  %2099 = vmatpush3.bf16.msra.mxu1 %v2350_v24  ;;  %v2392_v60 = vld [vmem:[#allocation2 + $0x8] ss:$12 sps:$4 sm:$0xff]   ;;  %v2396_v61 = vld [vmem:[#allocation2 + $0x20] ss:$12 sps:$4 sm:$0xff]   ;;  %v2400_v62 = vld [vmem:[#allocation2 + $0x38] ss:$12 sps:$4 sm:$0xff]  }
  0x5e   :  { %2100 = vmatprep.subr.bf16.mxu1 %v2354_v25  ;;  %v2408_v1 = vld [vmem:[#allocation2 + $0x68] ss:$12 sps:$4 sm:$0xff]   ;;  %v2412_v2 = vld [vmem:[#allocation2 + $0x80] ss:$12 sps:$4 sm:$0xff]   ;;  %v2416_v3 = vld [vmem:[#allocation2 + $0x98] ss:$12 sps:$4 sm:$0xff]  }
  0x5f   :  { %vm647_vm3 = vcmask 195584   ;;  %v2419_v42 = vld [vmem:[#allocation2 + $0xac] ss:$12 sps:$4 sm:$0xff]   ;;  %vm1824_vm4 = vcmask 64512  }
  0x60   :  { %494 = vmatpush1.bf16.msra.mxu0 %v2337_v22 }
  0x61   :  { %495 = vmatprep.subr.bf16.mxu0 %v2341_v23  ;;  %2101 = vmatpush3.bf16.msra.mxu1 %v2355_v28  ;;  %v180_v28 = vld [vmem:[%s3074_s6] sm:$0xf] }
  0x62   :  { %2102 = vmatprep.subr.bf16.mxu1 %v2359_v29  ;;  %v2389_v29 = vld [vmem:[#allocation2] ss:$12 sps:$4 sm:$0xff]  }
  0x64   :  { %496 = vmatpush1.bf16.msra.mxu0 %v2343_v26  ;;  %v2391_v26 = vld [vmem:[#allocation2 + $0x4] ss:$12 sps:$4 sm:$0xff]  }
  0x65   :  { %497 = vmatprep.subr.bf16.mxu0 %v2346_v27  ;;  %2103 = vmatpush3.bf16.msra.mxu1 %v2360_v32  ;;  %v2399_v32 = vld [vmem:[#allocation2 + $0x34] ss:$12 sps:$4 sm:$0xff]  }
  0x66   :  { %2104 = vmatprep.subr.bf16.mxu1 %v2364_v33  ;;  %v2397_v33 = vld [vmem:[#allocation2 + $0x30] ss:$12 sps:$4 sm:$0xff]  }
  0x68   :  { %498 = vmatpush1.bf16.msra.mxu0 %v2348_v30  ;;  %v2395_v30 = vld [vmem:[#allocation2 + $0x1c] ss:$12 sps:$4 sm:$0xff]  }
  0x69   :  { %499 = vmatprep.subr.bf16.mxu0 %v2351_v31  ;;  %2105 = vmatpush3.bf16.msra.mxu1 %v2365_v36  ;;  %v2393_v31 = vld [vmem:[#allocation2 + $0x18] ss:$12 sps:$4 sm:$0xff]  }
  0x6a   :  { %2106 = vmatprep.subr.bf16.mxu1 %v2369_v37  ;;  %v2407_v36 = vld [vmem:[#allocation2 + $0x64] ss:$12 sps:$4 sm:$0xff]   ;;  %v2405_v37 = vld [vmem:[#allocation2 + $0x60] ss:$12 sps:$4 sm:$0xff]  }
  0x6c   :  { %500 = vmatpush1.bf16.msra.mxu0 %v2353_v34  ;;  %v2403_v34 = vld [vmem:[#allocation2 + $0x4c] ss:$12 sps:$4 sm:$0xff]  }
  0x6d   :  { %501 = vmatprep.subr.bf16.mxu0 %v2356_v35  ;;  %2107 = vmatpush3.bf16.msra.mxu1 %v2370_v40  ;;  %v2401_v35 = vld [vmem:[#allocation2 + $0x48] ss:$12 sps:$4 sm:$0xff]  }
  0x6e   :  { %2108 = vmatprep.subr.bf16.mxu1 %v2374_v41  ;;  %v2415_v40 = vld [vmem:[#allocation2 + $0x94] ss:$12 sps:$4 sm:$0xff]   ;;  %v2413_v41 = vld [vmem:[#allocation2 + $0x90] ss:$12 sps:$4 sm:$0xff]  }
  0x70   :  { %502 = vmatpush1.bf16.msra.mxu0 %v2358_v38  ;;  %v2411_v38 = vld [vmem:[#allocation2 + $0x7c] ss:$12 sps:$4 sm:$0xff]  }
  0x71   :  { %503 = vmatprep.subr.bf16.mxu0 %v2361_v39  ;;  %2109 = vmatpush3.bf16.msra.mxu1 %v2375_v46  ;;  %v2409_v39 = vld [vmem:[#allocation2 + $0x78] ss:$12 sps:$4 sm:$0xff]  }
  0x72   :  { %2185 = vmatprep.subr.bf16.mxu1 %v2613_v53 }
  0x74   :  { %504 = vmatpush1.bf16.msra.mxu0 %v2363_v43  ;;  %598 = vmatmul.mubr.bf16.vlgmr.msra.gmra.mrb[4].mxu1 %v2921_v50  ;;  %v2417_v43 = vld [vmem:[#allocation2 + $0xa8] ss:$12 sps:$4 sm:$0xff]  }
  0x75   :  { %505 = vmatprep.subr.bf16.mxu0 %v2366_v45  ;;  %2186 = vmatpush3.bf16.msra.mxu1 %v2381_v49  ;;  %v2420_v45 = vld [vmem:[#allocation2 + $0xb0] ss:$12 sps:$4 sm:$0xff]  }
  0x76   :  { %2189 = vmatprep.mubr.msk.bf16.mxu1 %vm2614_vm1, %v2613_v53  ;;  %2187 = vmatprep.subr.bf16.mxu1 %v2613_v53 }
  0x78   :  { %506 = vmatpush1.bf16.msra.mxu0 %v2368_v47 }
  0x79   :  { %507 = vmatprep.subr.bf16.mxu0 %v2371_v48  ;;  %2188 = vmatpush3.bf16.msra.mxu1 %v2385_v54 }
  0x7a   :  { %2193 = vmatprep.subr.bf16.mxu1 %v2613_v53 }
  0x7c   :  { %508 = vmatpush1.bf16.msra.mxu0 %v2373_v51  ;;  %2190 = vmatmul.mubr.msk.bf16.vlgmr.msra.gmra.mrb[8].mxu1 %vm479_vm0, %v2814_v15 }
  0x7d   :  { %509 = vmatprep.subr.bf16.mxu0 %v2376_v52  ;;  %2197 = vmatprep.mubr.msk.bf16.mxu1 %vm2614_vm1, %v2613_v53 }
  0x80   :  { %510 = vmatpush1.bf16.msra.mxu0 %v2378_v55 }
  0x81   :  { %511 = vmatprep.subr.bf16.mxu0 %v2382_v56 }
  0x84   :  { %512 = vmatpush1.bf16.msra.mxu0 %v2384_v57 }
  0x85   :  { %513 = vmatprep.subr.bf16.mxu0 %v2386_v58 }
  0x88   :  { %514 = vmatpush1.bf16.msra.mxu0 %v2388_v59 }
  0x89   :  { %2201 = vmatprep.subr.bf16.mxu0 %v2613_v53 }
  0x8b   :  { %516 = vmatmul.mubr.bf16.vlgmr.msra.gmra.mrb[0].mxu0 %v2921_v50 }
  0x8c   :  { %2217 = vmatprep.mubr.msk.bf16.mxu0 %vm2614_vm1, %v2613_v53  ;;  %2202 = vmatpush3.bf16.msra.mxu0 %v2392_v60 }
  0x8d   :  { %2203 = vmatprep.subr.bf16.mxu0 %v2613_v53 }
  0x90   :  { %2204 = vmatpush3.bf16.msra.mxu0 %v2396_v61 }
  0x91   :  { %2205 = vmatprep.subr.bf16.mxu0 %v2613_v53 }
  0x94   :  { %2206 = vmatpush3.bf16.msra.mxu0 %v2400_v62 }
  0x95   :  { %2207 = vmatprep.subr.bf16.mxu0 %v2613_v53 }
  0x98   :  { %2208 = vmatpush3.bf16.msra.mxu0 %v2404_v63 }
  0x99   :  { %2209 = vmatprep.subr.bf16.mxu0 %v2613_v53 }
  0x9c   :  { %2210 = vmatpush3.bf16.msra.mxu0 %v2408_v1  ;;  %v728_v1 = vld [vmem:[%s3075_s7] sm:$0xf] }
  0x9d   :  { %2211 = vmatprep.subr.bf16.mxu0 %v2613_v53 }
  0xa0   :  { %2212 = vmatpush3.bf16.msra.mxu0 %v2412_v2 }
  0xa1   :  { %2213 = vmatprep.subr.bf16.mxu0 %v2613_v53 }
  0xa4   :  { %2214 = vmatpush3.bf16.msra.mxu0 %v2416_v3 }
  0xa5   :  { %2215 = vmatprep.subr.bf16.mxu0 %v2613_v53 }
  0xa8   :  { %2216 = vmatpush3.bf16.msra.mxu0 %v2420_v45  ;;  %v2452_v45 = vld [vmem:[#allocation4 + $0xb0] ss:$12 sps:$4 sm:$0xff]  }
  0xa9   :  { %2229 = vmatprep.subr.bf16.mxu0 %v2613_v53 }
 0x127   :  { %v558_v4 = vpop.f32.mrb[0].mxu1 }
 0x128   :  { %v560_v5 = vpop.f32.mrb[1].mxu1 }
 0x129   :  { %v562_v6 = vpop.f32.mrb[2].mxu1 }
 0x12a   :  { %v563_v7 = vpop.f32.mrb[3].mxu1 }
 0x12b   :  { %v2421_v7 = vld [vmem:[#allocation4] ss:$12 sps:$4 sm:$0xff]  }
 0x147   :  { %v2110_v8 = vpop.f32.mrb[4].mxu1 }
 0x148   :  { %v2111_v9 = vpop.f32.mrb[5].mxu1 }
 0x149   :  { %v2112_v10 = vadd.f32 %v2111_v9, %v2110_v8  ;;  %v2113_v11 = vpop.f32.mrb[6].mxu1  ;;  %v2423_v8 = vld [vmem:[#allocation4 + $0x4] ss:$12 sps:$4 sm:$0xff]   ;;  %v2424_v9 = vld [vmem:[#allocation4 + $0x8] ss:$12 sps:$4 sm:$0xff]  }
 0x14a   :  { %v2114_v12 = vpop.f32.mrb[7].mxu1  ;;  %v2428_v11 = vld [vmem:[#allocation4 + $0x20] ss:$12 sps:$4 sm:$0xff]  }
 0x14b   :  { %v2425_v12 = vld [vmem:[#allocation4 + $0x18] ss:$12 sps:$4 sm:$0xff]  }
 0x14f   :  { %v639_v13 = vpop.f32.mrb[8].mxu1 }
 0x150   :  { %v640_v14 = vadd.f32 %v2112_v10, %v639_v13  ;;  %v2191_v15 = vpop.f32.mrb[9].mxu1  ;;  %v2427_v10 = vld [vmem:[#allocation4 + $0x1c] ss:$12 sps:$4 sm:$0xff]   ;;  %v2431_v13 = vld [vmem:[#allocation4 + $0x34] ss:$12 sps:$4 sm:$0xff]  }
 0x151   :  { %v642_v16 = vpop.f32.mrb[10].mxu1  ;;  %v2429_v15 = vld [vmem:[#allocation4 + $0x30] ss:$12 sps:$4 sm:$0xff]  }
 0x152   :  { %v2192_v17 = vpop.f32.mrb[11].mxu1  ;;  %v646_v25 = vpack.c.bf16 %v640_v14, %v640_v14  ;;  %v2432_v14 = vld [vmem:[#allocation4 + $0x38] ss:$12 sps:$4 sm:$0xff]  }
 0x153   :  { %v2435_v16 = vld [vmem:[#allocation4 + $0x4c] ss:$12 sps:$4 sm:$0xff]   ;;  %v2436_v17 = vld [vmem:[#allocation4 + $0x50] ss:$12 sps:$4 sm:$0xff]  }
 0x154   :  { %v653_v27 = vsel %vm651_vm2, %v646_v25, 0 }
 0x15e   :  { %v517_v18 = vpop.f32.mrb[0].mxu0 }
 0x15f   :  { %v559_v19 = vadd.f32 %v558_v4, %v517_v18  ;;  %v519_v20 = vpop.f32.mrb[1].mxu0  ;;  %v2433_v18 = vld [vmem:[#allocation4 + $0x48] ss:$12 sps:$4 sm:$0xff]  }
 0x160   :  { %v561_v21 = vadd.f32 %v560_v5, %v519_v20  ;;  %v521_v22 = vpop.f32.mrb[2].mxu0  ;;  %v2440_v20 = vld [vmem:[#allocation4 + $0x68] ss:$12 sps:$4 sm:$0xff]  }
 0x161   :  { %v522_v23 = vpop.f32.mrb[3].mxu0  ;;  %v2443_v22 = vld [vmem:[#allocation4 + $0x7c] ss:$12 sps:$4 sm:$0xff]  }
 0x162   :  { %v645_v24 = vpack.c.bf16 %v561_v21, %v559_v19  ;;  %v2439_v19 = vld [vmem:[#allocation4 + $0x64] ss:$12 sps:$4 sm:$0xff]   ;;  %v2437_v21 = vld [vmem:[#allocation4 + $0x60] ss:$12 sps:$4 sm:$0xff]  }
 0x163   :  { %v2444_v23 = vld [vmem:[#allocation4 + $0x80] ss:$12 sps:$4 sm:$0xff]  }
 0x164   :  { %2194 = vmatpush3.bf16.msra.mxu1 %v645_v24  ;;  %v2441_v24 = vld [vmem:[#allocation4 + $0x78] ss:$12 sps:$4 sm:$0xff]  }
 0x165   :  { %2195 = vmatprep.subr.bf16.mxu1 %v2613_v53 }
 0x168   :  { %2196 = vmatpush3.bf16.msra.mxu1 %v653_v27 }
 0x169   :  { %857 = vmatprep.subr.bf16.mxu1 %v2391_v26 }
 0x16b   :  { %2198 = vmatmul.mubr.msk.bf16.vlgmr.msra.gmra.mrb[12].mxu1 %vm647_vm3, %v180_v28 }
 0x16c   :  { %858 = vmatpush1.bf16.msra.mxu1 %v2389_v29  ;;  %889 = vmatprep.mubr.bf16.mxu1 %v2612_v0 }
 0x16d   :  { %859 = vmatprep.subr.bf16.mxu1 %v2395_v30 }
 0x170   :  { %860 = vmatpush1.bf16.msra.mxu1 %v2393_v31 }
 0x171   :  { %861 = vmatprep.subr.bf16.mxu1 %v2399_v32 }
 0x174   :  { %862 = vmatpush1.bf16.msra.mxu1 %v2397_v33  ;;  %v986_v33 = vld [vmem:[%s3079_s11] sm:$0xff] }
 0x175   :  { %863 = vmatprep.subr.bf16.mxu1 %v2403_v34 }
 0x178   :  { %864 = vmatpush1.bf16.msra.mxu1 %v2401_v35 }
 0x179   :  { %865 = vmatprep.subr.bf16.mxu1 %v2407_v36  ;;  %v987_v36 = vld [vmem:[%s3080_s12] sm:$0xff] }
 0x17c   :  { %866 = vmatpush1.bf16.msra.mxu1 %v2405_v37 }
 0x17d   :  { %867 = vmatprep.subr.bf16.mxu1 %v2411_v38  ;;  %v2445_v38 = vld [vmem:[#allocation4 + $0x90] ss:$12 sps:$4 sm:$0xff]  }
 0x180   :  { %868 = vmatpush1.bf16.msra.mxu1 %v2409_v39  ;;  %v2447_v39 = vld [vmem:[#allocation4 + $0x94] ss:$12 sps:$4 sm:$0xff]  }
 0x181   :  { %869 = vmatprep.subr.bf16.mxu1 %v2415_v40  ;;  %v2448_v40 = vld [vmem:[#allocation4 + $0x98] ss:$12 sps:$4 sm:$0xff]  }
 0x184   :  { %870 = vmatpush1.bf16.msra.mxu1 %v2413_v41 }
 0x185   :  { %871 = vmatprep.subr.bf16.mxu1 %v2419_v42  ;;  %v2451_v42 = vld [vmem:[#allocation4 + $0xac] ss:$12 sps:$4 sm:$0xff]  }
 0x188   :  { %872 = vmatpush1.bf16.msra.mxu1 %v2417_v43  ;;  %v2449_v43 = vld [vmem:[#allocation4 + $0xa8] ss:$12 sps:$4 sm:$0xff]  }
 0x189   :  { %2221 = vmatprep.subr.bf16.mxu1 %v2613_v53 }
 0x23e   :  { %v689_v46 = vpop.f32.mrb[12].mxu1 }
 0x23f   :  { %v695_v47 = vpack.c.bf16 %v689_v46, %v689_v46  ;;  %v2199_v48 = vpop.f32.mrb[13].mxu1 }
 0x240   :  { %v692_v49 = vpop.f32.mrb[14].mxu1 }
 0x241   :  { %v2200_v51 = vpop.f32.mrb[15].mxu1  ;;  %890 = vmatmul.mubr.bf16.vlgmr.msra.gmra.mrb[16].mxu1 %v695_v47  ;;  %2218 = vmatmul.mubr.bf16.vlgmr.msra.gmra.mrb[4].mxu0 %v695_v47 }
 0x242   :  { %2225 = vmatprep.mubr.msk.bf16.mxu1 %vm2614_vm1, %v2613_v53  ;;  %2245 = vmatprep.mubr.msk.bf16.mxu0 %vm2614_vm1, %v2613_v53 }
 0x243   :  { %2230 = vmatpush3.bf16.msra.mxu0 %v2424_v9 }
 0x244   :  { %2231 = vmatprep.subr.bf16.mxu0 %v2613_v53 }
 0x247   :  { %2232 = vmatpush3.bf16.msra.mxu0 %v2428_v11  ;;  %v2453_v11 = vld [vmem:[#allocation6] ss:$12 sps:$4 sm:$0xff]  }
 0x248   :  { %2233 = vmatprep.subr.bf16.mxu0 %v2613_v53 }
 0x24b   :  { %2234 = vmatpush3.bf16.msra.mxu0 %v2432_v14  ;;  %v2463_v14 = vld [vmem:[#allocation6 + $0x34] ss:$12 sps:$4 sm:$0xff]  }
 0x24c   :  { %2235 = vmatprep.subr.bf16.mxu0 %v2613_v53 }
 0x24f   :  { %2236 = vmatpush3.bf16.msra.mxu0 %v2436_v17  ;;  %v2465_v17 = vld [vmem:[#allocation6 + $0x48] ss:$12 sps:$4 sm:$0xff]  }
 0x250   :  { %2237 = vmatprep.subr.bf16.mxu0 %v2613_v53 }
 0x253   :  { %2238 = vmatpush3.bf16.msra.mxu0 %v2440_v20  ;;  %v2475_v20 = vld [vmem:[#allocation6 + $0x7c] ss:$12 sps:$4 sm:$0xff]  }
 0x254   :  { %2239 = vmatprep.subr.bf16.mxu0 %v2613_v53 }
 0x257   :  { %2240 = vmatpush3.bf16.msra.mxu0 %v2444_v23  ;;  %v2483_v23 = vld [vmem:[#allocation6 + $0xac] ss:$12 sps:$4 sm:$0xff]  }
 0x258   :  { %2241 = vmatprep.subr.bf16.mxu0 %v2613_v53 }
 0x25b   :  { %2242 = vmatpush3.bf16.msra.mxu0 %v2448_v40  ;;  %v2494_v40 = vld [vmem:[#allocation7 + $0x20] sm:$0xff]  }
 0x25c   :  { %2243 = vmatprep.subr.bf16.mxu0 %v2613_v53 }
 0x25f   :  { %2244 = vmatpush3.bf16.msra.mxu0 %v2452_v45  ;;  %v2498_v45 = vld [vmem:[#allocation7 + $0x30] sm:$0xff]  }
 0x260   :  { %2257 = vmatprep.subr.bf16.mxu0 %v2613_v53 }
 0x314   :  { %v891_v52 = vpop.f32.mrb[16].mxu1  ;;  %v932_v54 = vpop.f32.mrb[4].mxu0 }
 0x315   :  { %v893_v55 = vpop.f32.mrb[17].mxu1  ;;  %v2219_v56 = vpop.f32.mrb[5].mxu0  ;;  %v939_v60 = vpack.c.bf16 %v932_v54, %v932_v54  ;;  %v2456_v54 = vld [vmem:[#allocation6 + $0x8] ss:$12 sps:$4 sm:$0xff]  }
 0x316   :  { %v938_v57 = vpack.c.bf16 %v893_v55, %v891_v52  ;;  %v895_v58 = vpop.f32.mrb[18].mxu1  ;;  %v935_v59 = vpop.f32.mrb[6].mxu0  ;;  %v2460_v55 = vld [vmem:[#allocation6 + $0x20] ss:$12 sps:$4 sm:$0xff]   ;;  %v2464_v56 = vld [vmem:[#allocation6 + $0x38] ss:$12 sps:$4 sm:$0xff]  }
 0x317   :  { %v896_v61 = vpop.f32.mrb[19].mxu1  ;;  %v2220_v62 = vpop.f32.mrb[7].mxu0  ;;  %v944_v63 = vsel %vm651_vm2, %v939_v60, 0  ;;  %v2472_v58 = vld [vmem:[#allocation6 + $0x68] ss:$12 sps:$4 sm:$0xff]  }
 0x318   :  { %2222 = vmatpush3.bf16.msra.mxu1 %v938_v57  ;;  %v2468_v57 = vld [vmem:[#allocation6 + $0x50] ss:$12 sps:$4 sm:$0xff]   ;;  %v2476_v59 = vld [vmem:[#allocation6 + $0x80] ss:$12 sps:$4 sm:$0xff]   ;;  %v2480_v60 = vld [vmem:[#allocation6 + $0x98] ss:$12 sps:$4 sm:$0xff]  }
 0x319   :  { %2223 = vmatprep.subr.bf16.mxu1 %v2613_v53 }
 0x31c   :  { %2224 = vmatpush3.bf16.msra.mxu1 %v944_v63 }
 0x31d   :  { %1178 = vmatprep.subr.bf16.mxu1 %v2423_v8  ;;  %v2455_v8 = vld [vmem:[#allocation6 + $0x4] ss:$12 sps:$4 sm:$0xff]  }
 0x31f   :  { %2226 = vmatmul.mubr.msk.bf16.vlgmr.msra.gmra.mrb[20].mxu1 %vm647_vm3, %v728_v1 }
 0x320   :  { %1210 = vmatprep.mubr.bf16.mxu1 %v2612_v0  ;;  %1179 = vmatpush1.bf16.msra.mxu1 %v2421_v7 }
 0x321   :  { %1180 = vmatprep.subr.bf16.mxu1 %v2427_v10  ;;  %v1049_v10 = vld [vmem:[%s3076_s8] sm:$0xf] }
 0x324   :  { %1181 = vmatpush1.bf16.msra.mxu1 %v2425_v12  ;;  %v2459_v12 = vld [vmem:[#allocation6 + $0x1c] ss:$12 sps:$4 sm:$0xff]  }
 0x325   :  { %1182 = vmatprep.subr.bf16.mxu1 %v2431_v13  ;;  %v2457_v13 = vld [vmem:[#allocation6 + $0x18] ss:$12 sps:$4 sm:$0xff]  }
 0x328   :  { %1183 = vmatpush1.bf16.msra.mxu1 %v2429_v15  ;;  %v2461_v15 = vld [vmem:[#allocation6 + $0x30] ss:$12 sps:$4 sm:$0xff]  }
 0x329   :  { %1184 = vmatprep.subr.bf16.mxu1 %v2435_v16  ;;  %v2467_v16 = vld [vmem:[#allocation6 + $0x4c] ss:$12 sps:$4 sm:$0xff]  }
 0x32c   :  { %1185 = vmatpush1.bf16.msra.mxu1 %v2433_v18  ;;  %v2471_v18 = vld [vmem:[#allocation6 + $0x64] ss:$12 sps:$4 sm:$0xff]  }
 0x32d   :  { %1186 = vmatprep.subr.bf16.mxu1 %v2439_v19  ;;  %v2469_v19 = vld [vmem:[#allocation6 + $0x60] ss:$12 sps:$4 sm:$0xff]  }
 0x330   :  { %1187 = vmatpush1.bf16.msra.mxu1 %v2437_v21  ;;  %v2473_v21 = vld [vmem:[#allocation6 + $0x78] ss:$12 sps:$4 sm:$0xff]  }
 0x331   :  { %1188 = vmatprep.subr.bf16.mxu1 %v2443_v22  ;;  %v2479_v22 = vld [vmem:[#allocation6 + $0x94] ss:$12 sps:$4 sm:$0xff]  }
 0x334   :  { %1189 = vmatpush1.bf16.msra.mxu1 %v2441_v24  ;;  %v2481_v24 = vld [vmem:[#allocation6 + $0xa8] ss:$12 sps:$4 sm:$0xff]  }
 0x335   :  { %1190 = vmatprep.subr.bf16.mxu1 %v2447_v39  ;;  %v2493_v39 = vld [vmem:[#allocation7 + $0x60] sm:$0xff]  }
 0x338   :  { %1191 = vmatpush1.bf16.msra.mxu1 %v2445_v38  ;;  %v2492_v38 = vld [vmem:[#allocation7 + $0x18] sm:$0xff]  }
 0x339   :  { %1192 = vmatprep.subr.bf16.mxu1 %v2451_v42  ;;  %v2496_v42 = vld [vmem:[#allocation7 + $0x28] sm:$0xff]  }
 0x33c   :  { %1193 = vmatpush1.bf16.msra.mxu1 %v2449_v43  ;;  %v2497_v43 = vld [vmem:[#allocation7 + $0x70] sm:$0xff]  }
 0x33d   :  { %2249 = vmatprep.subr.bf16.mxu1 %v2613_v53 }
 0x3f2   :  { %v2988_v2 = vpop.f32.mrb[20].mxu1 }
 0x3f3   :  { %988 = vadd.xlane.f32.xlu0 %v2988_v2  ;;  %v2227_v3 = vpop.f32.mrb[21].mxu1  ;;  %v991_v6 = vmul.f32 %v2988_v2, %v2988_v2 }
 0x3f4   :  { %v983_v4 = vpop.f32.mrb[22].mxu1 }
 0x3f5   :  { %v2228_v5 = vpop.f32.mrb[23].mxu1 }
 0x3f7   :  { %992 = vadd.xlane.f32.xlu0 %v991_v6 }
 0x480   :  { %v989_v25 = vpop.xlane.xlu0 %988 }
 0x481   :  { %v990_v26 = vmul.f32 0.03125, %v989_v25  ;;  %v2484_v25 = vld [vmem:[#allocation6 + $0xb0] ss:$12 sps:$4 sm:$0xff]  }
 0x483   :  { %v995_v28 = vmul.f32 %v990_v26, %v990_v26 }
 0x484   :  { %v993_v27 = vpop.xlane.xlu0 %992 }
 0x485   :  { %v994_v29 = vmul.f32 0.03125, %v993_v27 }
 0x487   :  { %v996_v30 = vsub.f32 %v994_v29, %v995_v28  ;;  %v2486_v28 = vld [vmem:[#allocation7] sm:$0xff]  }
 0x489   :  { %v997_v31 = vmax.f32 %v996_v30, 0.0 }
 0x48b   :  { %v998_v32 = vadd.f32 1e-05, %v997_v31  ;;  %v2487_v31 = vld [vmem:[#allocation7 + $0x48] sm:$0xff]  }
 0x48d   :  { %2503 = vrsqrt.f32 %v998_v32 }
 0x497   :  { %v2504_v34 = vpop.eup %2503 }
 0x498   :  { %v1000_v35 = vmul.f32 %v2504_v34, %v986_v33  ;;  %v2488_v34 = vld [vmem:[#allocation7 + $0x8] sm:$0xff]  }
 0x49a   :  { %1005 = vperm.xlu1 %2312, %v1000_v35   ;;  %v1001_v37 = vmul.f32 %v1000_v35, %v990_v26  ;;  %v2485_v26 = vld [vmem:[#allocation7 + $0x40] sm:$0xff]   ;;  %v2489_v35 = vld [vmem:[#allocation7 + $0x50] sm:$0xff]  }
 0x49c   :  { %v1002_v41 = vsub.f32 %v987_v36, %v1001_v37  ;;  %v2490_v36 = vld [vmem:[#allocation7 + $0x10] sm:$0xff]   ;;  %v2491_v37 = vld [vmem:[#allocation7 + $0x58] sm:$0xff]  }
 0x49e   :  { %1011 = vperm.xlu1 %2312, %v1002_v41   ;;  %v2495_v41 = vld [vmem:[#allocation7 + $0x68] sm:$0xff]  }
 0x519   :  { %v1006_v46 = vpop.permute.xlu1 %1005 }
 0x51a   :  { %v1008_v47 = vmul.f32 %v1006_v46, %v2988_v2  ;;  %v2500_v46 = vld [vmem:[#allocation7 + $0x38] sm:$0xff]  }
 0x51d   :  { %v1012_v48 = vpop.permute.xlu1 %1011 }
 0x51e   :  { %v1014_v49 = vadd.f32 %v1012_v48, %v1008_v47 }
 0x520   :  { %v1015_v51 = vmax.f32 %v1014_v49, 0.0 }
 0x522   :  { %v1016_v52 = vpack.c.bf16 %v1015_v51, %v1015_v51 }
 0x524   :  { %1211 = vmatmul.mubr.bf16.vlgmr.msra.gmra.mrb[24].mxu1 %v1016_v52  ;;  %2246 = vmatmul.mubr.bf16.vlgmr.msra.gmra.mrb[8].mxu0 %v1016_v52 }
 0x525   :  { %2253 = vmatprep.mubr.msk.bf16.mxu1 %vm2614_vm1, %v2613_v53  ;;  %2273 = vmatprep.mubr.msk.bf16.mxu0 %vm2614_vm1, %v2613_v53 }
 0x526   :  { %2258 = vmatpush3.bf16.msra.mxu0 %v2456_v54 }
 0x527   :  { %2259 = vmatprep.subr.bf16.mxu0 %v2613_v53 }
 0x52a   :  { %2260 = vmatpush3.bf16.msra.mxu0 %v2460_v55 }
 0x52b   :  { %2261 = vmatprep.subr.bf16.mxu0 %v2613_v53 }
 0x52e   :  { %2262 = vmatpush3.bf16.msra.mxu0 %v2464_v56 }
 0x52f   :  { %2263 = vmatprep.subr.bf16.mxu0 %v2613_v53 }
 0x532   :  { %2264 = vmatpush3.bf16.msra.mxu0 %v2468_v57 }
 0x533   :  { %2265 = vmatprep.subr.bf16.mxu0 %v2613_v53 }
 0x536   :  { %2266 = vmatpush3.bf16.msra.mxu0 %v2472_v58 }
 0x537   :  { %2267 = vmatprep.subr.bf16.mxu0 %v2613_v53 }
 0x53a   :  { %2268 = vmatpush3.bf16.msra.mxu0 %v2476_v59 }
 0x53b   :  { %2269 = vmatprep.subr.bf16.mxu0 %v2613_v53 }
 0x53e   :  { %2270 = vmatpush3.bf16.msra.mxu0 %v2480_v60  ;;  %v2501_v60 = vld [vmem:[#allocation7 + $0x80] sm:$0xff]  }
 0x53f   :  { %2271 = vmatprep.subr.bf16.mxu0 %v2613_v53 }
 0x542   :  { %2272 = vmatpush3.bf16.msra.mxu0 %v2484_v25 }
 0x543   :  { %2158 = vmatprep.subr.bf16.mxu0 %v2485_v26 }
 0x5f7   :  { %v1212_v61 = vpop.f32.mrb[24].mxu1  ;;  %v1253_v62 = vpop.f32.mrb[8].mxu0 }
 0x5f8   :  { %v1214_v63 = vpop.f32.mrb[25].mxu1  ;;  %v2247_v1 = vpop.f32.mrb[9].mxu0  ;;  %v1260_v5 = vpack.c.bf16 %v1253_v62, %v1253_v62  ;;  %v2509_v62 = vld [vmem:[%s3068_s0 + $0x8] ss:$0 sps:$4 sm:$0xff]  }
 0x5f9   :  { %v1259_v2 = vpack.c.bf16 %v1214_v63, %v1212_v61  ;;  %v1216_v3 = vpop.f32.mrb[26].mxu1  ;;  %v1256_v4 = vpop.f32.mrb[10].mxu0  ;;  %v2502_v61 = vld [vmem:[#allocation7 + $0x88] sm:$0xff]  }
 0x5fa   :  { %v1217_v6 = vpop.f32.mrb[27].mxu1  ;;  %v2248_v7 = vpop.f32.mrb[11].mxu0  ;;  %v1265_v9 = vsel %vm651_vm2, %v1260_v5, 0 }
 0x5fb   :  { %2250 = vmatpush3.bf16.msra.mxu1 %v1259_v2 }
 0x5fc   :  { %2251 = vmatprep.subr.bf16.mxu1 %v2613_v53 }
 0x5ff   :  { %2252 = vmatpush3.bf16.msra.mxu1 %v1265_v9 }
 0x600   :  { %1469 = vmatprep.subr.bf16.mxu1 %v2455_v8 }
 0x602   :  { %2254 = vmatmul.mubr.msk.bf16.vlgmr.msra.gmra.mrb[28].mxu1 %vm647_vm3, %v1049_v10 }
 0x603   :  { %1470 = vmatpush1.bf16.msra.mxu1 %v2453_v11  ;;  %1501 = vmatprep.mubr.bf16.mxu1 %v2612_v0  ;;  %v2477_v0 = vld [vmem:[#allocation6 + $0x90] ss:$12 sps:$4 sm:$0xff]  }
 0x604   :  { %1471 = vmatprep.subr.bf16.mxu1 %v2459_v12 }
 0x607   :  { %1472 = vmatpush1.bf16.msra.mxu1 %v2457_v13 }
 0x608   :  { %1473 = vmatprep.subr.bf16.mxu1 %v2463_v14 }
 0x60b   :  { %1474 = vmatpush1.bf16.msra.mxu1 %v2461_v15 }
 0x60c   :  { %1475 = vmatprep.subr.bf16.mxu1 %v2467_v16  ;;  %v1634_v16 = vld [vmem:[%s3078_s10] sm:$0xf] }
 0x60f   :  { %1476 = vmatpush1.bf16.msra.mxu1 %v2465_v17 }
 0x610   :  { %1477 = vmatprep.subr.bf16.mxu1 %v2471_v18 }
 0x613   :  { %1478 = vmatpush1.bf16.msra.mxu1 %v2469_v19 }
 0x614   :  { %1479 = vmatprep.subr.bf16.mxu1 %v2475_v20 }
 0x617   :  { %1480 = vmatpush1.bf16.msra.mxu1 %v2473_v21 }
 0x618   :  { %1481 = vmatprep.subr.bf16.mxu1 %v2479_v22 }
 0x61b   :  { %1482 = vmatpush1.bf16.msra.mxu1 %v2477_v0 }
 0x61c   :  { %1483 = vmatprep.subr.bf16.mxu1 %v2483_v23 }
 0x61f   :  { %1484 = vmatpush1.bf16.msra.mxu1 %v2481_v24 }
 0x620   :  { %2277 = vmatprep.subr.bf16.mxu1 %v2613_v53 }
 0x6d5   :  { %v1301_v27 = vpop.f32.mrb[28].mxu1 }
 0x6d6   :  { %v1307_v29 = vpack.c.bf16 %v1301_v27, %v1301_v27  ;;  %v2255_v30 = vpop.f32.mrb[29].mxu1 }
 0x6d7   :  { %v1304_v32 = vpop.f32.mrb[30].mxu1  ;;  %v1871_v30 = vld [vmem:[%s3081_s13] sm:$0xff] }
 0x6d8   :  { %v2256_v33 = vpop.f32.mrb[31].mxu1  ;;  %1502 = vmatmul.mubr.bf16.vlgmr.msra.gmra.mrb[32].mxu1 %v1307_v29  ;;  %2274 = vmatmul.mubr.bf16.vlgmr.msra.gmra.mrb[12].mxu0 %v1307_v29 }
 0x6d9   :  { %2159 = vmatpush3.bf16.msra.mxu0 %v2486_v28  ;;  %2281 = vmatprep.mubr.msk.bf16.mxu1 %vm2614_vm1, %v2613_v53 }
 0x6da   :  { %2160 = vmatprep.subr.bf16.mxu0 %v2487_v31  ;;  %1775 = vmatprep.mubr.bf16.mxu0 %v2902_v44  ;;  %v2499_v44 = vld [vmem:[#allocation7 + $0x78] sm:$0xff]  }
 0x6dd   :  { %2161 = vmatpush3.bf16.msra.mxu0 %v2488_v34 }
 0x6de   :  { %2162 = vmatprep.subr.bf16.mxu0 %v2489_v35 }
 0x6e1   :  { %2163 = vmatpush3.bf16.msra.mxu0 %v2490_v36 }
 0x6e2   :  { %2164 = vmatprep.subr.bf16.mxu0 %v2491_v37 }
 0x6e5   :  { %2165 = vmatpush3.bf16.msra.mxu0 %v2492_v38 }
 0x6e6   :  { %2166 = vmatprep.subr.bf16.mxu0 %v2493_v39 }
 0x6e9   :  { %2167 = vmatpush3.bf16.msra.mxu0 %v2494_v40  ;;  %v1872_v40 = vld [vmem:[%s3081_s13 + $0x8] sm:$0xff] }
 0x6ea   :  { %2168 = vmatprep.subr.bf16.mxu0 %v2495_v41 }
 0x6ed   :  { %2169 = vmatpush3.bf16.msra.mxu0 %v2496_v42 }
 0x6ee   :  { %2170 = vmatprep.subr.bf16.mxu0 %v2497_v43 }
 0x6f1   :  { %2171 = vmatpush3.bf16.msra.mxu0 %v2498_v45  ;;  %v1873_v45 = vld [vmem:[%s3082_s14] sm:$0xff] }
 0x6f2   :  { %2172 = vmatprep.subr.bf16.mxu0 %v2499_v44  ;;  %v1874_v44 = vld [vmem:[%s3082_s14 + $0x8] sm:$0xff] }
 0x6f5   :  { %2173 = vmatpush3.bf16.msra.mxu0 %v2500_v46 }
 0x6f8   :  { %1776 = vmatmul.mubr.bf16.vlgmr.msra.gmra.mrb[16].mxu0 %v2921_v50  ;;  %v1340_v50 = vld [vmem:[%s3077_s9] sm:$0xf] }
 0x7ab   :  { %v1503_v47 = vpop.f32.mrb[32].mxu1  ;;  %v1544_v48 = vpop.f32.mrb[12].mxu0 }
 0x7ac   :  { %v1505_v49 = vpop.f32.mrb[33].mxu1  ;;  %v2275_v51 = vpop.f32.mrb[13].mxu0  ;;  %v1551_v56 = vpack.c.bf16 %v1544_v48, %v1544_v48 }
 0x7ad   :  { %v1550_v52 = vpack.c.bf16 %v1505_v49, %v1503_v47  ;;  %v1507_v54 = vpop.f32.mrb[34].mxu1  ;;  %v1547_v55 = vpop.f32.mrb[14].mxu0 }
 0x7ae   :  { %v1508_v57 = vpop.f32.mrb[35].mxu1  ;;  %v2276_v58 = vpop.f32.mrb[15].mxu0  ;;  %v1556_v59 = vsel %vm651_vm2, %v1551_v56, 0 }
 0x7af   :  { %2278 = vmatpush3.bf16.msra.mxu1 %v1550_v52 }
 0x7b0   :  { %2279 = vmatprep.subr.bf16.mxu1 %v2613_v53 }
 0x7b3   :  { %2280 = vmatpush3.bf16.msra.mxu1 %v1556_v59 }
 0x7b4   :  { %2285 = vmatprep.subr.bf16.mxu1 %v2613_v53 }
 0x7b6   :  { %2282 = vmatmul.mubr.msk.bf16.vlgmr.msra.gmra.mrb[36].mxu1 %vm647_vm3, %v1340_v50 }
 0x7b7   :  { %2286 = vmatpush3.bf16.msra.mxu1 %v2501_v60  ;;  %2289 = vmatprep.mubr.msk.bf16.mxu1 %vm2614_vm1, %v2613_v53 }
 0x7b8   :  { %2287 = vmatprep.subr.bf16.mxu1 %v2613_v53 }
 0x7bb   :  { %2288 = vmatpush3.bf16.msra.mxu1 %v2502_v61 }
 0x7bc   :  { %2293 = vmatprep.subr.bf16.mxu1 %v2613_v53 }
 0x7be   :  { %2290 = vmatmul.mubr.msk.bf16.vlgmr.msra.gmra.mrb[40].mxu1 %vm479_vm0, %v2509_v62 }
 0x7bf   :  { %2295 = vmatprep.mubr.msk.bf16.mxu1 %vm2614_vm1, %v2613_v53 }
 0x7cb   :  { %v2174_v63 = vpop.f32.mrb[16].mxu0 }
 0x7cc   :  { %v2175_v1 = vpop.f32.mrb[17].mxu0 }
 0x7cd   :  { %v2176_v2 = vadd.f32 %v2175_v1, %v2174_v63  ;;  %v2177_v3 = vpop.f32.mrb[18].mxu0 }
 0x7ce   :  { %v2178_v4 = vpop.f32.mrb[19].mxu0 }
 0x889   :  { %v1592_v5 = vpop.f32.mrb[36].mxu1 }
 0x88a   :  { %1875 = vadd.xlane.f32.xlu0 %v1592_v5  ;;  %v2283_v6 = vpop.f32.mrb[37].mxu1  ;;  %v1881_v9 = vmul.f32 %v1592_v5, %v1592_v5 }
 0x88b   :  { %v1595_v7 = vpop.f32.mrb[38].mxu1 }
 0x88c   :  { %v2284_v8 = vpop.f32.mrb[39].mxu1 }
 0x88e   :  { %1883 = vadd.xlane.f32.xlu0 %v1881_v9 }
 0x891   :  { %v1817_v10 = vpop.f32.mrb[40].mxu1 }
 0x892   :  { %v1818_v11 = vadd.f32 %v2176_v2, %v1817_v10  ;;  %v2291_v12 = vpop.f32.mrb[41].mxu1 }
 0x893   :  { %v1820_v13 = vpop.f32.mrb[42].mxu1 }
 0x894   :  { %v1823_v14 = vpack.c.bf16 %v1818_v11, %v1818_v11  ;;  %v2292_v15 = vpop.f32.mrb[43].mxu1 }
 0x896   :  { %v1829_v53 = vsel %vm651_vm2, %v1823_v14, 0 }
 0x897   :  { %2294 = vmatpush3.bf16.msra.mxu1 %v1829_v53 }
 0x89a   :  { %2296 = vmatmul.mubr.msk.bf16.vlgmr.msra.gmra.mrb[44].mxu1 %vm1824_vm4, %v1634_v16 }
 0x917   :  { %v1876_v17 = vpop.xlane.xlu0 %1875 }
 0x918   :  { %v1879_v19 = vmul.f32 0.013888889, %v1876_v17 }
 0x91a   :  { %v1889_v21 = vmul.f32 %v1879_v19, %v1879_v19 }
 0x91b   :  { %v1884_v18 = vpop.xlane.xlu0 %1883 }
 0x91c   :  { %v1887_v20 = vmul.f32 0.013888889, %v1884_v18 }
 0x91e   :  { %v1891_v22 = vsub.f32 %v1887_v20, %v1889_v21 }
 0x920   :  { %v1893_v25 = vmax.f32 %v1891_v22, 0.0 }
 0x922   :  { %v1895_v28 = vadd.f32 1e-05, %v1893_v25 }
 0x924   :  { %2505 = vrsqrt.f32 %v1895_v28 }
 0x92e   :  { %v2506_v29 = vpop.eup %2505 }
 0x92f   :  { %v1899_v31 = vmul.f32 %v2506_v29, %v1871_v30 }
 0x931   :  { %v1901_v43 = vmul.f32 %v1899_v31, %v1879_v19 }
 0x933   :  { %v1903_v47 = vsub.f32 %v1873_v45, %v1901_v43 }
 0x96d   :  { %v1865_v0 = vpop.f32.mrb[44].mxu1 }
 0x96e   :  { %1877 = vadd.xlane.f32.xlu1 %v1865_v0  ;;  %v1882_v23 = vmul.f32 %v1865_v0, %v1865_v0  ;;  %v2297_v24 = vpop.f32.mrb[45].mxu1 }
 0x96f   :  { %v1868_v26 = vpop.f32.mrb[46].mxu1 }
 0x970   :  { %1885 = vadd.xlane.f32.xlu0 %v1882_v23  ;;  %v2298_v27 = vpop.f32.mrb[47].mxu1 }
 0x986   :  { %1907 = vperm.xlu0 %2313, %v1899_v31  }
 0x9fb   :  { %v1878_v32 = vpop.xlane.xlu1 %1877 }
 0x9fc   :  { %v1880_v33 = vmul.f32 0.013888889, %v1878_v32 }
 0x9fd   :  { %v1886_v34 = vpop.xlane.xlu0 %1885 }
 0x9fe   :  { %v1890_v35 = vmul.f32 %v1880_v33, %v1880_v33  ;;  %v1888_v36 = vmul.f32 0.013888889, %v1886_v34 }
 0xa00   :  { %v1892_v37 = vsub.f32 %v1888_v36, %v1890_v35 }
 0xa02   :  { %v1894_v38 = vmax.f32 %v1892_v37, 0.0 }
 0xa04   :  { %v1896_v39 = vadd.f32 1e-05, %v1894_v38 }
 0xa05   :  { %v1908_v49 = vpop.permute.xlu0 %1907 }
 0xa06   :  { %2507 = vrsqrt.f32 %v1896_v39  ;;  %v1915_v52 = vmul.f32 %v1908_v49, %v1592_v5 }
 0xa10   :  { %v2508_v41 = vpop.eup %2507 }
 0xa11   :  { %v1900_v42 = vmul.f32 %v2508_v41, %v1872_v40 }
 0xa13   :  { %1912 = vperm.xlu1 %2312, %v1900_v42   ;;  %v1902_v46 = vmul.f32 %v1900_v42, %v1880_v33 }
 0xa15   :  { %v1904_v48 = vsub.f32 %v1874_v44, %v1902_v46 }
 0xa17   :  { %1919 = vperm.xlu1 %2312, %v1903_v47   ;;  %1924 = vperm.xlu0 %2313, %v1904_v48  }
 0xa92   :  { %v1913_v51 = vpop.permute.xlu1 %1912 }
 0xa93   :  { %v1916_v54 = vmul.f32 %v1913_v51, %v1865_v0 }
 0xa96   :  { %v1920_v55 = vpop.permute.xlu1 %1919  ;;  %v1925_v56 = vpop.permute.xlu0 %1924 }
 0xa97   :  { %v1927_v57 = vadd.f32 %v1920_v55, %v1915_v52  ;;  %v1928_v58 = vadd.f32 %v1925_v56, %v1916_v54 }
 0xa99   :  { %v1929_v59 = vadd.f32 %v1928_v58, %v1927_v57 }
 0xa9b   :  { %v1930_v50 = vmax.f32 %v1929_v59, 0.0 }
 0xa9d   :  { %1931 = vst [vmem:[%s3083_s15] sm:$0xff] %v1930_v50 }
 0xa9e   :  { %1936 = vsyncpa [#allocation3], 1 }
 0xa9f   :  { %1937 = vsyncpa [#allocation5], 1 }
 0xaa0   :  { %1938 = vsyncpa [#allocation8], 1 }

</bundles_post_ra>
